<compile_context>
chip_gen: v5e
topology: v5e:2x2
jax: 0.10.0
libtpu: 0.0.40
codegen_flags: <defaults>
</compile_context>

<pallas_src>
import functools

import jax
import jax.numpy as jnp
from jax.experimental import pallas as pl
from jax.experimental.pallas import tpu as pltpu


def _round_up(x, m):
    return (x + m - 1) // m * m


def _make_kernel(K):
    """K chained dot-accumulates (one per depth tap) + fused BN shift + ReLU."""

    def kernel(*refs):
        # refs = (x_ref_kd0, ..., x_ref_kd{K-1}, w_ref, shift_ref, o_ref)
        x_refs = refs[:K]        # each (1, 1, TM, KKC_P) bf16 im2col rows
        w_ref = refs[K]          # (K, KKC_P, COUT_P) bf16, BN scale folded in
        shift_ref = refs[K + 1]  # (1, COUT_P) f32
        o_ref = refs[K + 2]      # (1, 1, TM, COUT_P)

        # Chained dot-accumulate over the K depth taps; acc stays a traced
        # (TM, COUT_P) f32 value (register / MRB resident), not a VMEM scratch
        # that gets a load+add+store pass per tap.
        acc = jnp.dot(x_refs[0][0, 0], w_ref[0],
                      preferred_element_type=jnp.float32)
        for kd in range(1, K):
            acc = acc + jnp.dot(x_refs[kd][0, 0], w_ref[kd],
                                preferred_element_type=jnp.float32)

        # Fused BatchNorm shift (scale already folded into weights) + ReLU.
        o_ref[0, 0] = jnp.maximum(acc + shift_ref[0], 0.0).astype(o_ref.dtype)

    return kernel


@functools.partial(
    jax.jit,
    static_argnames=("stride", "padding", "eps", "out_dtype", "block_rows"))
def basic_conv3d(x, weight, bias, gamma, beta, running_mean, running_var, *,
                 stride=1, padding=0, eps=1e-3, out_dtype=jnp.float32,
                 block_rows=512):
    """x: (N, Cin, D, H, W) float32 (PyTorch NCDHW). Returns (N, Cout, Do, Ho, Wo)."""
    N, Cin, D, H, W = x.shape
    Cout, _, K, _, _ = weight.shape

    Do = (D + 2 * padding - K) // stride + 1
    Ho = (H + 2 * padding - K) // stride + 1
    Wo = (W + 2 * padding - K) // stride + 1
    Dp = D + 2 * padding

    # Contraction axis = (kh, kw, cin) taps folded together, padded once to a
    # multiple of 128 lanes (36 -> 128 here, vs. 27 taps x a 4->128 padded Cin
    # in rev 2).  Output lanes padded to a multiple of 128 (>=256-wide blocks
    # come for free on v6e/v7x whenever Cout > 128 since Cout is not tiled).
    KKC = K * K * Cin
    KKC_P = _round_up(KKC, 128)
    COUT_P = _round_up(Cout, 128)

    # Output positions flattened (ho, wo) -> m and tiled in TM-row blocks so
    # the per-tile accumulator stays bounded.  TM is a multiple of 8 (sublane)
    # and M is padded up to a whole number of blocks.
    M = Ho * Wo
    TM = min(block_rows, _round_up(M, 8))
    M_pad = _round_up(M, TM)

    # ---- wrapper-side layout plumbing (XLA) --------------------------------
    # NCDHW -> NDHWC, zero-pad the spatial dims (conv padding), cast to bf16.
    x_l = jnp.transpose(x, (0, 2, 3, 4, 1)).astype(jnp.bfloat16)
    x_p = jnp.pad(x_l, ((0, 0), (padding, padding), (padding, padding),
                        (padding, padding), (0, 0)))

    # im2col over (kh, kw): for every output position gather its K*K spatial
    # taps (all Cin channels) into the channel axis.  The strided slices also
    # absorb the conv stride, so the kernel only ever sees dense unit-stride
    # rows.
    taps = []
    for kh in range(K):
        for kw in range(K):
            taps.append(jax.lax.slice(
                x_p,
                (0, 0, kh, kw, 0),
                (N, Dp, kh + (Ho - 1) * stride + 1,
                 kw + (Wo - 1) * stride + 1, Cin),
                (1, 1, stride, stride, 1)))            # (N, Dp, Ho, Wo, Cin)
    x_col = jnp.concatenate(taps, axis=-1)             # (N, Dp, Ho, Wo, KKC)
    x_col = x_col.reshape(N, Dp, M, KKC)
    x_col = jnp.pad(x_col, ((0, 0), (0, 0), (0, M_pad - M), (0, KKC_P - KKC)))

    # Fold BatchNorm (inference form) scale into the weights; keep the shift.
    scale = gamma / jnp.sqrt(running_var + eps)        # (Cout,)
    shift = (bias - running_mean) * scale + beta       # (Cout,)

    # (Cout, Cin, Kd, Kh, Kw) -> (Kd, Kh, Kw, Cin, Cout): per depth tap the
    # (kh, kw, cin) axes flatten in exactly the x_col tap order above.
    w_l = jnp.transpose(weight, (2, 3, 4, 1, 0)) * scale
    w_l = w_l.reshape(K, KKC, Cout)
    w_l = jnp.pad(w_l, ((0, 0), (0, KKC_P - KKC), (0, COUT_P - Cout)))
    w_l = w_l.astype(jnp.bfloat16)

    shift_p = jnp.pad(shift, (0, COUT_P - Cout)).reshape(1, COUT_P)
    shift_p = shift_p.astype(jnp.float32)

    # ---- Pallas call ---------------------------------------------------------
    kernel = _make_kernel(K)

    # x_col is passed K times: view kd supplies padded-input depth row
    # d*stride + kd for output depth d (block size 1 on depth => block index
    # == element index).
    x_specs = [
        pl.BlockSpec((1, 1, TM, KKC_P),
                     lambda n, d, m, kd=kd: (n, d * stride + kd, m, 0))
        for kd in range(K)
    ]
    w_spec = pl.BlockSpec((K, KKC_P, COUT_P), lambda n, d, m: (0, 0, 0))
    shift_spec = pl.BlockSpec((1, COUT_P), lambda n, d, m: (0, 0))
    out_spec = pl.BlockSpec((1, 1, TM, COUT_P), lambda n, d, m: (n, d, m, 0))

    # Per-step VMEM, worst case (everything double-buffered): K x-views, the
    # weight/shift slabs and the output tile.  2x headroom, clamped to v7x's
    # 64 MiB physical VMEM.
    out_bytes = jnp.dtype(out_dtype).itemsize
    vmem_est = (K * 2 * TM * KKC_P * 2          # x views, bf16
                + 2 * K * KKC_P * COUT_P * 2    # weights, bf16
                + 2 * COUT_P * 4                # shift, f32
                + 2 * TM * COUT_P * out_bytes)  # output tile
    vmem_limit = int(min(64 * 2 ** 20, max(2 * vmem_est, 16 * 2 ** 20)))

    out = pl.pallas_call(
        kernel,
        out_shape=jax.ShapeDtypeStruct((N, Do, M_pad, COUT_P), out_dtype),
        grid=(N, Do, M_pad // TM),
        in_specs=x_specs + [w_spec, shift_spec],
        out_specs=out_spec,
        compiler_params=pltpu.CompilerParams(
            dimension_semantics=("parallel", "parallel", "parallel"),
            vmem_limit_bytes=vmem_limit),
    )(*([x_col] * K), w_l, shift_p)

    # (N, Do, M_pad, COUT_P) -> (N, Cout, Do, Ho, Wo); un-pad rows & lanes.
    out = out[:, :, :M, :Cout].reshape(N, Do, Ho, Wo, Cout)
    return jnp.transpose(out, (0, 4, 1, 2, 3))


def _reference(x, weight, bias, gamma, beta, running_mean, running_var,
               *, stride, padding, eps):
    y = jax.lax.conv_general_dilated(
        x, weight,
        window_strides=(stride, stride, stride),
        padding=[(padding, padding)] * 3,
        dimension_numbers=("NCDHW", "OIDHW", "NCDHW"),
    )
    Cout = weight.shape[0]
    bshape = (1, Cout, 1, 1, 1)
    y = y + bias.reshape(bshape)
    y = (y - running_mean.reshape(bshape)) / jnp.sqrt(
        running_var.reshape(bshape) + eps)
    y = y * gamma.reshape(bshape) + beta.reshape(bshape)
    return jnp.maximum(y, 0.0)


if __name__ == "__main__":
    key = jax.random.PRNGKey(0)
    k_x, k_w, k_b = jax.random.split(key, 3)

    # Small S3D-G-style config: kernel_size=3, stride=1, padding=1.
    N, Cin, Cout, D, H, W, K = 2, 4, 8, 8, 8, 8, 3
    stride, padding, eps = 1, 1, 1e-3

    x = jax.random.normal(k_x, (N, Cin, D, H, W), dtype=jnp.float32)

    # Deterministic parameter init (shapes from nn.Conv3d / nn.BatchNorm3d).
    fan_in = Cin * K * K * K
    weight = jax.random.normal(k_w, (Cout, Cin, K, K, K), jnp.float32) / jnp.sqrt(fan_in)
    bias = 0.1 * jax.random.normal(k_b, (Cout,), jnp.float32)
    gamma = jnp.ones((Cout,), jnp.float32)           # BN weight init
    beta = jnp.zeros((Cout,), jnp.float32)           # BN bias init
    running_mean = jnp.zeros((Cout,), jnp.float32)   # BN running_mean init
    running_var = jnp.ones((Cout,), jnp.float32)     # BN running_var init

    out = basic_conv3d(x, weight, bias, gamma, beta, running_mean, running_var,
                       stride=stride, padding=padding, eps=eps)
    out = jax.block_until_ready(out)

    ref = _reference(x, weight, bias, gamma, beta, running_mean, running_var,
                     stride=stride, padding=padding, eps=eps)
    assert out.shape == ref.shape, (out.shape, ref.shape)
    # bf16 operands with f32 accumulation -> tolerance loosened accordingly.
    max_err = float(jnp.max(jnp.abs(out - ref)))
    assert jnp.allclose(out, ref, atol=3e-2, rtol=3e-2), max_err

    print("KERNEL_OK")
</pallas_src>

<mosaic_0001>
module attributes {stable_mosaic.version = 11 : i64} {
  func.func @kernel(%arg0: i32, %arg1: i32, %arg2: i32, %arg3: memref<1x1x64x128xbf16, #tpu.memory_space<vmem>>, %arg4: memref<1x1x64x128xbf16, #tpu.memory_space<vmem>>, %arg5: memref<1x1x64x128xbf16, #tpu.memory_space<vmem>>, %arg6: memref<3x128x128xbf16, #tpu.memory_space<vmem>>, %arg7: memref<1x128xf32, #tpu.memory_space<vmem>>, %arg8: memref<1x1x64x128xf32, #tpu.memory_space<vmem>>) attributes {dimension_semantics = [#tpu.dimension_semantics<parallel>, #tpu.dimension_semantics<parallel>, #tpu.dimension_semantics<parallel>], iteration_bounds = array<i64: 2, 8, 1>, scalar_prefetch = 0 : i64, scratch_operands = 0 : i64, tpu.core_type = #tpu.core_type<tc>, window_params = [{transform_indices = @transform_0, window_bounds = array<i64: 1, 1, 64, 128>}, {transform_indices = @transform_1, window_bounds = array<i64: 1, 1, 64, 128>}, {transform_indices = @transform_2, window_bounds = array<i64: 1, 1, 64, 128>}, {pipeline_mode = #tpu.pipeline_mode<synchronous>, transform_indices = @transform_3, window_bounds = array<i64: 3, 128, 128>}, {pipeline_mode = #tpu.pipeline_mode<synchronous>, transform_indices = @transform_4, window_bounds = array<i64: 1, 128>}, {transform_indices = @transform_5, window_bounds = array<i64: 1, 1, 64, 128>}]} {
    %c0 = arith.constant 0 : index
    %c0_0 = arith.constant 0 : index
    %c0_1 = arith.constant 0 : index
    %c0_2 = arith.constant 0 : index
    %0 = vector.load %arg3[%c0, %c0_0, %c0_1, %c0_2] : memref<1x1x64x128xbf16, #tpu.memory_space<vmem>>, vector<1x1x64x128xbf16>
    %1 = vector.shape_cast %0 : vector<1x1x64x128xbf16> to vector<64x128xbf16>
    %c0_3 = arith.constant 0 : index
    %c0_4 = arith.constant 0 : index
    %c0_5 = arith.constant 0 : index
    %2 = vector.load %arg6[%c0_3, %c0_4, %c0_5] : memref<3x128x128xbf16, #tpu.memory_space<vmem>>, vector<1x128x128xbf16>
    %3 = vector.shape_cast %2 : vector<1x128x128xbf16> to vector<128x128xbf16>
    %cst = arith.constant dense<0.000000e+00> : vector<64x128xf32>
    %4 = tpu.matmul %1, %3, %cst {dimension_numbers = #tpu.dot_dimension_numbers<[1], [0], [0], [1], [0, 0, 1, 1], [], []>} : vector<64x128xbf16>, vector<128x128xbf16>, vector<64x128xf32> -> vector<64x128xf32>
    %c0_6 = arith.constant 0 : index
    %c0_7 = arith.constant 0 : index
    %c0_8 = arith.constant 0 : index
    %c0_9 = arith.constant 0 : index
    %5 = vector.load %arg4[%c0_6, %c0_7, %c0_8, %c0_9] : memref<1x1x64x128xbf16, #tpu.memory_space<vmem>>, vector<1x1x64x128xbf16>
    %6 = vector.shape_cast %5 : vector<1x1x64x128xbf16> to vector<64x128xbf16>
    %c1 = arith.constant 1 : index
    %c0_10 = arith.constant 0 : index
    %c0_11 = arith.constant 0 : index
    %7 = vector.load %arg6[%c1, %c0_10, %c0_11] : memref<3x128x128xbf16, #tpu.memory_space<vmem>>, vector<1x128x128xbf16>
    %8 = vector.shape_cast %7 : vector<1x128x128xbf16> to vector<128x128xbf16>
    %cst_12 = arith.constant dense<0.000000e+00> : vector<64x128xf32>
    %9 = tpu.matmul %6, %8, %cst_12 {dimension_numbers = #tpu.dot_dimension_numbers<[1], [0], [0], [1], [0, 0, 1, 1], [], []>} : vector<64x128xbf16>, vector<128x128xbf16>, vector<64x128xf32> -> vector<64x128xf32>
    %10 = arith.addf %4, %9 : vector<64x128xf32>
    %c0_13 = arith.constant 0 : index
    %c0_14 = arith.constant 0 : index
    %c0_15 = arith.constant 0 : index
    %c0_16 = arith.constant 0 : index
    %11 = vector.load %arg5[%c0_13, %c0_14, %c0_15, %c0_16] : memref<1x1x64x128xbf16, #tpu.memory_space<vmem>>, vector<1x1x64x128xbf16>
    %12 = vector.shape_cast %11 : vector<1x1x64x128xbf16> to vector<64x128xbf16>
    %c2 = arith.constant 2 : index
    %c0_17 = arith.constant 0 : index
    %c0_18 = arith.constant 0 : index
    %13 = vector.load %arg6[%c2, %c0_17, %c0_18] : memref<3x128x128xbf16, #tpu.memory_space<vmem>>, vector<1x128x128xbf16>
    %14 = vector.shape_cast %13 : vector<1x128x128xbf16> to vector<128x128xbf16>
    %cst_19 = arith.constant dense<0.000000e+00> : vector<64x128xf32>
    %15 = tpu.matmul %12, %14, %cst_19 {dimension_numbers = #tpu.dot_dimension_numbers<[1], [0], [0], [1], [0, 0, 1, 1], [], []>} : vector<64x128xbf16>, vector<128x128xbf16>, vector<64x128xf32> -> vector<64x128xf32>
    %16 = arith.addf %10, %15 : vector<64x128xf32>
    %c0_20 = arith.constant 0 : index
    %c0_21 = arith.constant 0 : index
    %17 = vector.load %arg7[%c0_20, %c0_21] : memref<1x128xf32, #tpu.memory_space<vmem>>, vector<1x128xf32>
    %18 = vector.shape_cast %17 : vector<1x128xf32> to vector<128xf32>
    %19 = vector.shape_cast %18 : vector<128xf32> to vector<1x128xf32>
    %20 = vector.broadcast %19 : vector<1x128xf32> to vector<64x128xf32>
    %21 = arith.addf %16, %20 : vector<64x128xf32>
    %cst_22 = arith.constant 0.000000e+00 : f32
    %22 = vector.broadcast %cst_22 : f32 to vector<64x128xf32>
    %23 = arith.maximumf %21, %22 : vector<64x128xf32>
    %c0_23 = arith.constant 0 : index
    %c0_24 = arith.constant 0 : index
    %c0_25 = arith.constant 0 : index
    %c0_26 = arith.constant 0 : index
    %24 = vector.load %arg8[%c0_23, %c0_24, %c0_25, %c0_26] : memref<1x1x64x128xf32, #tpu.memory_space<vmem>>, vector<1x1x64x128xf32>
    %25 = vector.shape_cast %24 : vector<1x1x64x128xf32> to vector<64x128xf32>
    %26 = vector.shape_cast %23 : vector<64x128xf32> to vector<1x1x64x128xf32>
    tpu.vector_store %arg8[%c0_23, %c0_24, %c0_25, %c0_26], %26 {strides = array<i32>} : memref<1x1x64x128xf32, #tpu.memory_space<vmem>>, vector<1x1x64x128xf32>,
    return
  }
  func.func @transform_0(%arg0: i32, %arg1: i32, %arg2: i32) -> (i32, i32, i32, i32) {
    %c1_i32 = arith.constant 1 : i32
    %0 = arith.muli %arg1, %c1_i32 : i32
    %c0_i32 = arith.constant 0 : i32
    %1 = arith.addi %0, %c0_i32 : i32
    %c0_i32_0 = arith.constant 0 : i32
    %c0_i32_1 = arith.constant 0 : i32
    return %arg0, %1, %arg2, %c0_i32_0 : i32, i32, i32, i32
  }
  func.func @transform_1(%arg0: i32, %arg1: i32, %arg2: i32) -> (i32, i32, i32, i32) {
    %c1_i32 = arith.constant 1 : i32
    %0 = arith.muli %arg1, %c1_i32 : i32
    %c1_i32_0 = arith.constant 1 : i32
    %1 = arith.addi %0, %c1_i32_0 : i32
    %c0_i32 = arith.constant 0 : i32
    %c0_i32_1 = arith.constant 0 : i32
    return %arg0, %1, %arg2, %c0_i32 : i32, i32, i32, i32
  }
  func.func @transform_2(%arg0: i32, %arg1: i32, %arg2: i32) -> (i32, i32, i32, i32) {
    %c1_i32 = arith.constant 1 : i32
    %0 = arith.muli %arg1, %c1_i32 : i32
    %c2_i32 = arith.constant 2 : i32
    %1 = arith.addi %0, %c2_i32 : i32
    %c0_i32 = arith.constant 0 : i32
    %c0_i32_0 = arith.constant 0 : i32
    return %arg0, %1, %arg2, %c0_i32 : i32, i32, i32, i32
  }
  func.func @transform_3(%arg0: i32, %arg1: i32, %arg2: i32) -> (i32, i32, i32) {
    %c0_i32 = arith.constant 0 : i32
    %c0_i32_0 = arith.constant 0 : i32
    %c0_i32_1 = arith.constant 0 : i32
    %c0_i32_2 = arith.constant 0 : i32
    return %c0_i32, %c0_i32_0, %c0_i32_1 : i32, i32, i32
  }
  func.func @transform_4(%arg0: i32, %arg1: i32, %arg2: i32) -> (i32, i32) {
    %c0_i32 = arith.constant 0 : i32
    %c0_i32_0 = arith.constant 0 : i32
    %c0_i32_1 = arith.constant 0 : i32
    return %c0_i32, %c0_i32_0 : i32, i32
  }
  func.func @transform_5(%arg0: i32, %arg1: i32, %arg2: i32) -> (i32, i32, i32, i32) {
    %c0_i32 = arith.constant 0 : i32
    %c0_i32_0 = arith.constant 0 : i32
    return %arg0, %arg1, %arg2, %c0_i32 : i32, i32, i32, i32
  }
}

</mosaic_0001>

<bundles_post_ra>
// kernel: basic_conv3d.1
= control target key start
LH: loop header
LB: loop body
LE: loop exit
PB: predicated region body
PF: predicated region fallthrough
CT: control target
= control target key end

     0   :  { %s1333_s18 = smov 0   ;;  %s1335_s19 = smov 0   ;;  %s1491_s0 = inlined_call_operand.vmem [shape: bf16[2,10,64,128], index: 0, kind: input, shape index: {}, may-alias: {0,1,2}]   ;;  %s1492_s1 = inlined_call_operand.vmem [shape: bf16[2,10,64,128], index: 1, kind: input, shape index: {}, may-alias: {0,1,2}]   ;;  %s1493_s2 = inlined_call_operand.vmem [shape: bf16[2,10,64,128], index: 2, kind: input, shape index: {}, may-alias: {0,1,2}]   ;;  %s1494_s3 = inlined_call_operand.vmem [shape: bf16[3,128,128], index: 3, kind: input, shape index: {}]   ;;  %s1495_s4 = inlined_call_operand.vmem [shape: f32[1,128], index: 4, kind: input, shape index: {}]   ;;  %s1496_s5 = inlined_call_operand.vmem [shape: f32[2,8,64,128], index: 5, kind: output, shape index: {}]  }
   0x1   :  { %s1337_s20 = smov 0   ;;  %s1339_s21 = smov 0  }
   0x2   :  { %s1341_s22 = smov 0  }
   0x3 LB: > { %s30_s23 = sadd.s32 1, %s1293_s20  ;;  %s34_s24 = sadd.s32 1, %s1297_s21  ;;  %s1301_s22 = sphi %s1341_s22, %s15_s22   ;;  %s1297_s21 = sphi %s1339_s21, %s1500_s21   ;;  %s1293_s20 = sphi %s1337_s20, %s1499_s20   ;;  %s1289_s19 = sphi %s1335_s19, %s1498_s19   ;;  %s1285_s18 = sphi %s1333_s18, %s1497_s18  }
   0x4   : > { %p32_p0 = scmp.ge.s32.totalorder %s30_s23, 8  ;;  %p989_p1 = scmp.ge.s32.totalorder %s1301_s22, 1 }
   0x5   : > { %p277_p2 = scmp.lt.s32.totalorder %s1301_s22, 17 }
   0x6   : > { %s1502_s23 = smov (%p32_p0, %s30_s23), 0  ;;  %s1504_s24 = smov (!%p32_p0, %s34_s24), %s1297_s21 }
   0x7   : > { %p278_p3 = pnand %p989_p1, %p277_p2  ;;  %p36_p4 = scmp.ge.s32.totalorder %s1504_s24, 2 }
   0x8   : > { %s363_s12 = sadd.s32 (!%p278_p3), 1, %s1285_s18  ;;  %p350_p5 = scmp.lt.s32.totalorder (!%p278_p3), %s1289_s19, 1 }
   0x9   : > { %s1506_s24 = smov (%p36_p4, %s1504_s24), 0  ;;  %281 = sbr.rel (%p278_p3) target bundleno = 243 (0xf3), region = 40 }
   0xa   : > { %s379_s26 = sadd.s32 (!%p278_p3), 2, %s1285_s18  ;;  %p367_p6 = scmp.lt.s32.totalorder (!%p278_p3), %s363_s12, 9 }
   0xb   : > { %p352_p7 = scmp.lt.s32.totalorder (!%p278_p3), %s1285_s18, 9  ;;  %p383_p8 = scmp.lt.s32.totalorder (!%p278_p3), %s379_s26, 9 }
   0xc   : > { %p398_p9 = scmp.lt.s32.totalorder (!%p278_p3), %s1285_s18, 7 }
   0xe   : > { %v1200_v0 = vld [vmem:[%s1494_s3 + $0x78] sm:$0xff]  ;;  %v1199_v3 = vld [vmem:[%s1494_s3 + $0x70] sm:$0xff]  ;;  %v1198_v6 = vld [vmem:[%s1494_s3 + $0x68] sm:$0xff]  ;;  %s1508_s19 = smov (!%p350_p5, %s1289_s19), 1  ;;  %s1510_s12 = smov (!%p367_p6, %s363_s12), 9 }
   0xf   : > { %v1188_v1 = vld [vmem:[%s1494_s3 + $0x38] sm:$0xff]  ;;  %530 = vmatpush.bf16.msra.mxu0 %v1200_v0  ;;  %v1187_v4 = vld [vmem:[%s1494_s3 + $0x30] sm:$0xff]  ;;  %1213 = vmatpush.bf16.msra.mxu3 %v1200_v0  ;;  %v1186_v7 = vld [vmem:[%s1494_s3 + $0x28] sm:$0xff]  ;;  %s353_s8 = scalar_select %p352_p7, %s1285_s18, 9 }
  0x10   : > { %v1212_v2 = vld [vmem:[%s1494_s3 + $0xb8] sm:$0xff]  ;;  %631 = vmatpush.bf16.msra.mxu1 %v1188_v1  ;;  %v1211_v5 = vld [vmem:[%s1494_s3 + $0xb0] sm:$0xff]  ;;  %v1210_v8 = vld [vmem:[%s1494_s3 + $0xa8] sm:$0xff]  ;;  %s1512_s26 = smov (!%p383_p8, %s379_s26), 9  ;;  %s1221_s16 = smul.u32 80, %s1508_s19 }
  0x11   : > { %757 = vmatpush.bf16.msra.mxu2 %v1212_v2  ;;  %v1197_v9 = vld [vmem:[%s1494_s3 + $0x60] sm:$0xff]  ;;  %v1196_v12 = vld [vmem:[%s1494_s3 + $0x58] sm:$0xff]  ;;  %s992_s17 = sshll.u32 %s1510_s12, 3  ;;  %s990_s25 = sshll.u32 %s353_s8, 3  ;;  %v1195_v15 = vld [vmem:[%s1494_s3 + $0x50] sm:$0xff] }
  0x12   : > { %v1185_v10 = vld [vmem:[%s1494_s3 + $0x20] sm:$0xff]  ;;  %v1184_v13 = vld [vmem:[%s1494_s3 + $0x18] sm:$0xff]  ;;  %v1183_v16 = vld [vmem:[%s1494_s3 + $0x10] sm:$0xff]  ;;  %s994_s6 = sshll.u32 %s1512_s26, 3  ;;  %s374_s10 = sadd.s32 %s1221_s16, %s992_s17 }
  0x13   : > { %531 = vmatpush.bf16.msra.mxu0 %v1199_v3  ;;  %1214 = vmatpush.bf16.msra.mxu3 %v1199_v3  ;;  %v1209_v11 = vld [vmem:[%s1494_s3 + $0xa0] sm:$0xff]  ;;  %v1208_v14 = vld [vmem:[%s1494_s3 + $0x98] sm:$0xff]  ;;  %v1207_v17 = vld [vmem:[%s1494_s3 + $0x90] sm:$0xff]  ;;  %s359_s12 = sadd.s32 %s1221_s16, %s990_s25  ;;  %s390_s8 = sadd.s32 %s1221_s16, %s994_s6 }
  0x14   : > { %632 = vmatpush.bf16.msra.mxu1 %v1187_v4  ;;  %v1194_v18 = vld [vmem:[%s1494_s3 + $0x48] sm:$0xff]  ;;  %s993_s28 = sshll.u32 %s374_s10, 2  ;;  %s991_s17 = sshll.u32 %s359_s12, 2  ;;  %v1193_v21 = vld [vmem:[%s1494_s3 + $0x40] sm:$0xff] }
  0x15   : > { %758 = vmatpush.bf16.msra.mxu2 %v1211_v5  ;;  %v1182_v19 = vld [vmem:[%s1494_s3 + $0x8] sm:$0xff]  ;;  %s995_s25 = sshll.u32 %s390_s8, 2  ;;  %v1181_v22 = vld [vmem:[%s1494_s3] sm:$0xff]  ;;  %s376_s11 = scalar_lea.vmem %s1492_s1, %s993_s28 }
  0x16   : > { %v1206_v20 = vld [vmem:[%s1494_s3 + $0x88] sm:$0xff]  ;;  %s361_s10 = scalar_lea.vmem %s1491_s0, %s991_s17  ;;  %v1205_v23 = vld [vmem:[%s1494_s3 + $0x80] sm:$0xff]  ;;  %s392_s27 = scalar_lea.vmem %s1493_s2, %s995_s25  ;;  %v1191_v30 = vld [vmem:[%s376_s11 + $0x10] sm:$0xff] }
  0x17   : > { %532 = vmatpush.bf16.msra.mxu0 %v1198_v6  ;;  %1215 = vmatpush.bf16.msra.mxu3 %v1198_v6  ;;  %v1189_v24 = vld [vmem:[%s376_s11] sm:$0xff]  ;;  %v1190_v27 = vld [vmem:[%s376_s11 + $0x8] sm:$0xff]  ;;  %v1179_v31 = vld [vmem:[%s361_s10 + $0x10] sm:$0xff]  ;;  %s1514_s18 = smov (!%p398_p9, %s1285_s18), 7  ;;  %s997_s17 = sshll.u32 %s1508_s19, 6 }
  0x18   : > { %633 = vmatpush.bf16.msra.mxu1 %v1186_v7  ;;  %v1177_v25 = vld [vmem:[%s361_s10] sm:$0xff]  ;;  %v1178_v28 = vld [vmem:[%s361_s10 + $0x8] sm:$0xff]  ;;  %v1203_v32 = vld [vmem:[%s392_s27 + $0x10] sm:$0xff]  ;;  %s996_s28 = sshll.u32 %s1514_s18, 3 }
  0x19   : > { %759 = vmatpush.bf16.msra.mxu2 %v1210_v8  ;;  %v1201_v26 = vld [vmem:[%s392_s27] sm:$0xff]  ;;  %v1202_v29 = vld [vmem:[%s392_s27 + $0x8] sm:$0xff]  ;;  %v1192_v33 = vld [vmem:[%s376_s11 + $0x18] sm:$0xff]  ;;  %s405_s25 = sadd.s32 %s997_s17, %s996_s28 }
  0x1a   : > { %v1180_v34 = vld [vmem:[%s361_s10 + $0x18] sm:$0xff]  ;;  %v1262_v39 = vld [vmem:[%s1495_s4] ss:$0 sm:$0xff]  ;;  %s998_s30 = sshll.u32 %s405_s25, 3 }
  0x1b   : > { %533 = vmatpush.bf16.msra.mxu0 %v1197_v9  ;;  %1216 = vmatpush.bf16.msra.mxu3 %v1197_v9  ;;  %v1204_v35 = vld [vmem:[%s392_s27 + $0x18] sm:$0xff]  ;;  %s1466_s9 = scalar_lea.vmem %s1496_s5, %s998_s30 }
  0x1c   : > { %634 = vmatpush.bf16.msra.mxu1 %v1185_v10 }
  0x1d   : > { %760 = vmatpush.bf16.msra.mxu2 %v1209_v11 }
  0x1f   : > { %534 = vmatpush.bf16.msra.mxu0 %v1196_v12  ;;  %1217 = vmatpush.bf16.msra.mxu3 %v1196_v12 }
  0x20   : > { %635 = vmatpush.bf16.msra.mxu1 %v1184_v13 }
  0x21   : > { %761 = vmatpush.bf16.msra.mxu2 %v1208_v14 }
  0x23   : > { %535 = vmatpush.bf16.msra.mxu0 %v1195_v15  ;;  %1218 = vmatpush.bf16.msra.mxu3 %v1195_v15 }
  0x24   : > { %636 = vmatpush.bf16.msra.mxu1 %v1183_v16 }
  0x25   : > { %762 = vmatpush.bf16.msra.mxu2 %v1207_v17 }
  0x27   : > { %536 = vmatpush.bf16.msra.mxu0 %v1194_v18  ;;  %1219 = vmatpush.bf16.msra.mxu3 %v1194_v18 }
  0x28   : > { %637 = vmatpush.bf16.msra.mxu1 %v1182_v19 }
  0x29   : > { %763 = vmatpush.bf16.msra.mxu2 %v1206_v20 }
  0x2b   : > { %537 = vmatpush.bf16.msra.mxu0 %v1193_v21  ;;  %1220 = vmatpush.bf16.msra.mxu3 %v1193_v21 }
  0x2c   : > { %638 = vmatpush.bf16.msra.mxu1 %v1181_v22 }
  0x2d   : > { %764 = vmatpush.bf16.msra.mxu2 %v1205_v23 }
  0x2e   : > { %538 = vmatmul.bf16.vlgmr.msra.gmra.mxu0 %v1189_v24  ;;  %543 = vmatmul.bf16.vlgmr.msra.gmra.mxu3 %v1190_v27 }
  0x2f   : > { %639 = vmatmul.bf16.vlgmr.msra.gmra.mxu1 %v1177_v25 }
  0x30   : > { %765 = vmatmul.bf16.vlgmr.msra.gmra.mxu2 %v1201_v26 }
  0x3e   : > { %548 = vmatmul.bf16.gmra.mxu3 %v1191_v30 }
  0x3f   : > { %644 = vmatmul.bf16.gmra.mxu1 %v1178_v28 }
  0x40   : > { %770 = vmatmul.bf16.gmra.mxu2 %v1202_v29 }
  0x4e   : > { %553 = vmatmul.bf16.gmra.mxu3 %v1192_v33 }
  0x4f   : > { %649 = vmatmul.bf16.gmra.mxu1 %v1179_v31 }
  0x50   : > { %775 = vmatmul.bf16.gmra.mxu2 %v1203_v32 }
  0x5f   : > { %654 = vmatmul.bf16.gmra.mxu1 %v1180_v34 }
  0x60   : > { %780 = vmatmul.bf16.gmra.mxu2 %v1204_v35 }
  0xab   : > { %v539_v37 = vpop.f32.mrf.mxu0 }
  0xac   : > { %v640_v36 = vpop.f32.mrf.mxu1 }
  0xad   : > { %v641_v38 = vadd.f32 %v640_v36, %v539_v37 }
  0xb1   : > { %v544_v45 = vpop.f32.mrf.mxu3 }
  0xb3   : > { %v766_v40 = vpop.f32.mrf.mxu2  ;;  %v541_v44 = vpop.f32.mrf.mxu0 }
  0xb4   : > { %v786_v41 = vadd.f32 %v766_v40, %v641_v38  ;;  %v642_v42 = vpop.f32.mrf.mxu1 }
  0xb5   : > { %v643_v47 = vadd.f32 %v642_v42, %v541_v44 }
  0xb6   : > { %v798_v43 = vadd.f32 %v1262_v39, %v786_v41 }
  0xb8   : > { %v806_v46 = vmax.f32 %v798_v43, 0.0 }
  0xb9   : > { %v546_v54 = vpop.f32.mrf.mxu3 }
  0xba   : > { %814 = vst [vmem:[%s1466_s9] sm:$0xff] %v806_v46 }
  0xbb   : > { %v768_v48 = vpop.f32.mrf.mxu2 }
  0xbc   : > { %v787_v49 = vadd.f32 %v768_v48, %v643_v47  ;;  %v645_v50 = vpop.f32.mrf.mxu1 }
  0xbd   : > { %v646_v53 = vadd.f32 %v645_v50, %v544_v45 }
  0xbe   : > { %v799_v51 = vadd.f32 %v1262_v39, %v787_v49 }
  0xc0   : > { %v807_v52 = vmax.f32 %v799_v51, 0.0 }
  0xc1   : > { %v549_v61 = vpop.f32.mrf.mxu3 }
  0xc2   : > { %815 = vst [vmem:[%s1466_s9 + $0x8] sm:$0xff] %v807_v52 }
  0xc3   : > { %v771_v55 = vpop.f32.mrf.mxu2 }
  0xc4   : > { %v788_v56 = vadd.f32 %v771_v55, %v646_v53  ;;  %v647_v57 = vpop.f32.mrf.mxu1 }
  0xc5   : > { %v648_v60 = vadd.f32 %v647_v57, %v546_v54 }
  0xc6   : > { %v800_v58 = vadd.f32 %v1262_v39, %v788_v56 }
  0xc8   : > { %v808_v59 = vmax.f32 %v800_v58, 0.0 }
  0xc9   : > { %v551_v7 = vpop.f32.mrf.mxu3 }
  0xca   : > { %816 = vst [vmem:[%s1466_s9 + $0x10] sm:$0xff] %v808_v59 }
  0xcb   : > { %v773_v62 = vpop.f32.mrf.mxu2 }
  0xcc   : > { %v789_v63 = vadd.f32 %v773_v62, %v648_v60  ;;  %v650_v0 = vpop.f32.mrf.mxu1 }
  0xcd   : > { %v651_v3 = vadd.f32 %v650_v0, %v549_v61 }
  0xce   : > { %v801_v1 = vadd.f32 %v1262_v39, %v789_v63 }
  0xd0   : > { %v809_v2 = vmax.f32 %v801_v1, 0.0 }
  0xd1   : > { %v554_v15 = vpop.f32.mrf.mxu3 }
  0xd2   : > { %817 = vst [vmem:[%s1466_s9 + $0x18] sm:$0xff] %v809_v2 }
  0xd3   : > { %v776_v4 = vpop.f32.mrf.mxu2 }
  0xd4   : > { %v790_v5 = vadd.f32 %v776_v4, %v651_v3  ;;  %v652_v6 = vpop.f32.mrf.mxu1 }
  0xd5   : > { %v653_v10 = vadd.f32 %v652_v6, %v551_v7 }
  0xd6   : > { %v802_v8 = vadd.f32 %v1262_v39, %v790_v5 }
  0xd8   : > { %v810_v9 = vmax.f32 %v802_v8, 0.0 }
  0xd9   : > { %v556_v23 = vpop.f32.mrf.mxu3 }
  0xda   : > { %818 = vst [vmem:[%s1466_s9 + $0x20] sm:$0xff] %v810_v9 }
  0xdb   : > { %v778_v11 = vpop.f32.mrf.mxu2 }
  0xdc   : > { %v791_v12 = vadd.f32 %v778_v11, %v653_v10  ;;  %v655_v13 = vpop.f32.mrf.mxu1 }
  0xdd   : > { %v656_v17 = vadd.f32 %v655_v13, %v554_v15 }
  0xde   : > { %v803_v14 = vadd.f32 %v1262_v39, %v791_v12 }
  0xe0   : > { %v811_v16 = vmax.f32 %v803_v14, 0.0 }
  0xe2   : > { %819 = vst [vmem:[%s1466_s9 + $0x28] sm:$0xff] %v811_v16 }
  0xe3   : > { %v781_v18 = vpop.f32.mrf.mxu2 }
  0xe4   : > { %v792_v19 = vadd.f32 %v781_v18, %v656_v17  ;;  %v657_v21 = vpop.f32.mrf.mxu1 }
  0xe5   : > { %v658_v24 = vadd.f32 %v657_v21, %v556_v23 }
  0xe6   : > { %v804_v20 = vadd.f32 %v1262_v39, %v792_v19 }
  0xe8   : > { %v812_v22 = vmax.f32 %v804_v20, 0.0 }
  0xea   : > { %820 = vst [vmem:[%s1466_s9 + $0x30] sm:$0xff] %v812_v22 }
  0xeb   : > { %v783_v25 = vpop.f32.mrf.mxu2 }
  0xec   : > { %v793_v26 = vadd.f32 %v783_v25, %v658_v24 }
  0xee   : > { %v805_v27 = vadd.f32 %v1262_v39, %v793_v26 }
  0xf0   : > { %v813_v28 = vmax.f32 %v805_v27, 0.0 }
  0xf2   : > { %821 = vst [vmem:[%s1466_s9 + $0x38] sm:$0xff] %v813_v28 }
  0xf3 PF: > { %s15_s22 = sadd.s32 1, %s1301_s22   ;;  %s1497_s18 = smov %s1293_s20 }
  0xf4   : > { %p12_p10 = scmp.ge.s32.totalorder %s15_s22, 18   ;;  %s1498_s19 = smov %s1297_s21 }
  0xf5   : > { %s1499_s20 = smov %s1502_s23  ;;  %s1500_s21 = smov %s1506_s24 }
  0xf6   :  { %14 = sbr.rel (!%p12_p10) target bundleno = 3 (0x3), region = 78 }

</bundles_post_ra>
